<compile_context>
chip_gen: v6e
topology: v6e:2x2x1
jax: 0.10.0
libtpu: 0.0.40
codegen_flags: <defaults>
</compile_context>

<pallas_src>
import functools

import jax
import jax.numpy as jnp
from jax.experimental import pallas as pl
from jax.experimental.pallas import tpu as pltpu


def mean_pool_conv(x_nchw, weight_oihw, bias, kernel_size):
    """MeanPoolConv forward: x_nchw (N,Cin,H,W) -> (N,Cout,H//2,W//2)."""
    N, Cin, H, W = x_nchw.shape
    Cout = weight_oihw.shape[0]
    K = kernel_size
    assert K % 2 == 1, "MeanPoolConv kernel requires odd kernel_size"
    assert H % 2 == 0 and W % 2 == 0, "2x2 mean pool requires even H and W"

    pad = (K - 1) // 2
    Hp, Wp = H // 2, W // 2
    Hpp, Wpp = Hp + 2 * pad, Wp + 2 * pad     # padded pooled image dims
    M = Hp * Wp                               # matmul rows (= output pixels)
    KKC = K * K * Cin                         # deep contraction

    # ---- wrapper-side packing (plain JAX glue) ----
    # NCHW -> NHWC transpose is unavoidable; the reshape after it is pure
    # metadata and folds the 2x2 pooling quad next to the channels:
    #   (N, Hp, 2, Wp, 2*Cin)   lane index = w_parity*Cin + c
    x_r = jnp.transpose(x_nchw, (0, 2, 3, 1)).reshape(N, Hp, 2, Wp, 2 * Cin)
    # Deep-matmul RHS, packed once: row index = (kh*K + kw)*Cin + ci.
    w_deep = (jnp.transpose(weight_oihw, (2, 3, 1, 0))
              .reshape(KKC, Cout).astype(jnp.bfloat16))
    b_2d = bias.reshape(1, Cout).astype(jnp.float32)

    # ---- the Pallas kernel: one batch element per grid step ----
    def kernel(x_ref, w_ref, b_ref, o_ref, pp_ref):
        # Phase 1: 2x2 mean pool on the VPU (no loop), single bf16 cast.
        xb = x_ref[0]                        # (Hp, 2, Wp, 2*Cin)
        s = xb[:, 0] + xb[:, 1]              # add H-parity rows  -> (Hp, Wp, 2*Cin)
        pooled = (0.25 * (s[..., :Cin] + s[..., Cin:])).astype(jnp.bfloat16)

        # Zero only the halo strips of the padded pooled image (interior is
        # fully overwritten below), every grid step so megacore splitting is safe.
        if pad > 0:
            pp_ref[0:pad, :, :] = jnp.zeros((pad, Wpp, Cin), jnp.bfloat16)
            pp_ref[pad + Hp:Hpp, :, :] = jnp.zeros((pad, Wpp, Cin), jnp.bfloat16)
            pp_ref[pad:pad + Hp, 0:pad, :] = jnp.zeros((Hp, pad, Cin), jnp.bfloat16)
            pp_ref[pad:pad + Hp, pad + Wp:Wpp, :] = jnp.zeros((Hp, pad, Cin), jnp.bfloat16)
        pp_ref[pad:pad + Hp, pad:pad + Wp, :] = pooled

        # Phase 2: build the im2col LHS (Hp*Wp, K*K*Cin) from K*K static tap
        # reads, then ONE deep MXU matmul + bias + single store.
        taps = []
        for kh in range(K):
            for kw in range(K):
                tap = pp_ref[kh:kh + Hp, kw:kw + Wp, :]     # (Hp, Wp, Cin) bf16
                taps.append(tap.reshape(M, Cin))
        col = jnp.concatenate(taps, axis=-1) if len(taps) > 1 else taps[0]
        out = jnp.dot(col, w_ref[...], preferred_element_type=jnp.float32)
        o_ref[0] = (out + b_ref[...]).astype(o_ref.dtype)

    out_flat = pl.pallas_call(
        kernel,
        out_shape=jax.ShapeDtypeStruct((N, M, Cout), x_nchw.dtype),
        grid_spec=pltpu.PrefetchScalarGridSpec(
            num_scalar_prefetch=0,
            grid=(N,),
            in_specs=[
                pl.BlockSpec((1, Hp, 2, Wp, 2 * Cin), lambda n: (n, 0, 0, 0, 0)),
                pl.BlockSpec((KKC, Cout), lambda n: (0, 0)),
                pl.BlockSpec((1, Cout), lambda n: (0, 0)),
            ],
            out_specs=pl.BlockSpec((1, M, Cout), lambda n: (n, 0, 0)),
            scratch_shapes=[
                pltpu.VMEM((Hpp, Wpp, Cin), jnp.bfloat16),   # padded pooled image
            ],
        ),
        compiler_params=pltpu.CompilerParams(dimension_semantics=("parallel",)),
    )(x_r, w_deep, b_2d)

    # Only layout glue left: metadata reshape + required NHWC->NCHW transpose.
    out = out_flat.reshape(N, Hp, Wp, Cout)
    return jnp.transpose(out, (0, 3, 1, 2))


def reference_mean_pool_conv(x, w, b, kernel_size):
    """Pure-JAX reference with identical semantics (NCHW)."""
    pad = (kernel_size - 1) // 2
    p = (x[:, :, ::2, ::2] + x[:, :, 1::2, ::2]
         + x[:, :, ::2, 1::2] + x[:, :, 1::2, 1::2]) / 4.0
    out = jax.lax.conv_general_dilated(
        p, w, window_strides=(1, 1), padding=[(pad, pad), (pad, pad)],
        dimension_numbers=("NCHW", "OIHW", "NCHW"))
    return out + b.reshape(1, -1, 1, 1)


if __name__ == "__main__":
    # Small, deterministic example consistent with MeanPoolConv(4, 8, 3)
    N, Cin, H, W = 2, 4, 16, 16
    Cout, K = 8, 3

    key = jax.random.PRNGKey(0)
    kx, kw, kb = jax.random.split(key, 3)
    x = jax.random.normal(kx, (N, Cin, H, W), dtype=jnp.float32)
    weight = 0.1 * jax.random.normal(kw, (Cout, Cin, K, K), dtype=jnp.float32)
    bias = 0.1 * jax.random.normal(kb, (Cout,), dtype=jnp.float32)

    run = jax.jit(functools.partial(mean_pool_conv, kernel_size=K))
    out = jax.block_until_ready(run(x, weight, bias))

    ref = reference_mean_pool_conv(x, weight, bias, K)
    assert out.shape == (N, Cout, H // 2, W // 2), out.shape
    # bf16 matmul operands / f32 accumulation -> ~1e-2 level agreement with f32 ref.
    assert jnp.allclose(out, ref, rtol=2e-2, atol=2e-2), (
        float(jnp.max(jnp.abs(out - ref))))

    print("KERNEL_OK")
</pallas_src>

<mosaic_0001>
module attributes {stable_mosaic.version = 11 : i64} {
  func.func @kernel(%arg0: i32, %arg1: memref<1x8x2x8x8xf32, #tpu.memory_space<vmem>>, %arg2: memref<36x8xbf16, #tpu.memory_space<vmem>>, %arg3: memref<1x8xf32, #tpu.memory_space<vmem>>, %arg4: memref<1x64x8xf32, #tpu.memory_space<vmem>>, %arg5: memref<10x10x4xbf16, #tpu.memory_space<vmem>>) attributes {dimension_semantics = [#tpu.dimension_semantics<parallel>], iteration_bounds = array<i64: 2>, scalar_prefetch = 0 : i64, scratch_operands = 1 : i64, tpu.core_type = #tpu.core_type<tc>, window_params = [{transform_indices = @transform_0, window_bounds = array<i64: 1, 8, 2, 8, 8>}, {pipeline_mode = #tpu.pipeline_mode<synchronous>, transform_indices = @transform_1, window_bounds = array<i64: 36, 8>}, {pipeline_mode = #tpu.pipeline_mode<synchronous>, transform_indices = @transform_2, window_bounds = array<i64: 1, 8>}, {transform_indices = @transform_3, window_bounds = array<i64: 1, 64, 8>}]} {
    %c0 = arith.constant 0 : index
    %c0_0 = arith.constant 0 : index
    %c0_1 = arith.constant 0 : index
    %c0_2 = arith.constant 0 : index
    %c0_3 = arith.constant 0 : index
    %0 = vector.load %arg1[%c0, %c0_0, %c0_1, %c0_2, %c0_3] : memref<1x8x2x8x8xf32, #tpu.memory_space<vmem>>, vector<1x8x2x8x8xf32>
    %1 = vector.shape_cast %0 : vector<1x8x2x8x8xf32> to vector<8x2x8x8xf32>
    %2 = vector.extract_strided_slice %1 {offsets = [0, 0, 0, 0], sizes = [8, 1, 8, 8], strides = [1, 1, 1, 1]} : vector<8x2x8x8xf32> to vector<8x1x8x8xf32>
    %3 = vector.shape_cast %2 : vector<8x1x8x8xf32> to vector<8x8x8xf32>
    %4 = vector.extract_strided_slice %1 {offsets = [0, 1, 0, 0], sizes = [8, 1, 8, 8], strides = [1, 1, 1, 1]} : vector<8x2x8x8xf32> to vector<8x1x8x8xf32>
    %5 = vector.shape_cast %4 : vector<8x1x8x8xf32> to vector<8x8x8xf32>
    %6 = arith.addf %3, %5 : vector<8x8x8xf32>
    %7 = vector.extract_strided_slice %6 {offsets = [0, 0, 0], sizes = [8, 8, 4], strides = [1, 1, 1]} : vector<8x8x8xf32> to vector<8x8x4xf32>
    %8 = vector.extract_strided_slice %6 {offsets = [0, 0, 4], sizes = [8, 8, 4], strides = [1, 1, 1]} : vector<8x8x8xf32> to vector<8x8x4xf32>
    %9 = arith.addf %7, %8 : vector<8x8x4xf32>
    %cst = arith.constant 2.500000e-01 : f32
    %10 = vector.broadcast %cst : f32 to vector<8x8x4xf32>
    %11 = arith.mulf %10, %9 : vector<8x8x4xf32>
    %12 = arith.truncf %11 : vector<8x8x4xf32> to vector<8x8x4xbf16>
    %cst_4 = arith.constant 0.000000e+00 : bf16
    %13 = vector.broadcast %cst_4 : bf16 to vector<1x10x4xbf16>
    %c0_5 = arith.constant 0 : index
    %c0_6 = arith.constant 0 : index
    %c0_7 = arith.constant 0 : index
    %14 = vector.load %arg5[%c0_5, %c0_6, %c0_7] : memref<10x10x4xbf16, #tpu.memory_space<vmem>>, vector<1x10x4xbf16>
    tpu.vector_store %arg5[%c0_5, %c0_6, %c0_7], %13 {strides = array<i32>} : memref<10x10x4xbf16, #tpu.memory_space<vmem>>, vector<1x10x4xbf16>,
    %cst_8 = arith.constant 0.000000e+00 : bf16
    %15 = vector.broadcast %cst_8 : bf16 to vector<1x10x4xbf16>
    %c9 = arith.constant 9 : index
    %c0_9 = arith.constant 0 : index
    %c0_10 = arith.constant 0 : index
    %16 = vector.load %arg5[%c9, %c0_9, %c0_10] : memref<10x10x4xbf16, #tpu.memory_space<vmem>>, vector<1x10x4xbf16>
    tpu.vector_store %arg5[%c9, %c0_9, %c0_10], %15 {strides = array<i32>} : memref<10x10x4xbf16, #tpu.memory_space<vmem>>, vector<1x10x4xbf16>,
    %cst_11 = arith.constant 0.000000e+00 : bf16
    %17 = vector.broadcast %cst_11 : bf16 to vector<8x1x4xbf16>
    %c1 = arith.constant 1 : index
    %c0_12 = arith.constant 0 : index
    %c0_13 = arith.constant 0 : index
    %18 = vector.load %arg5[%c1, %c0_12, %c0_13] : memref<10x10x4xbf16, #tpu.memory_space<vmem>>, vector<8x1x4xbf16>
    tpu.vector_store %arg5[%c1, %c0_12, %c0_13], %17 {strides = array<i32>} : memref<10x10x4xbf16, #tpu.memory_space<vmem>>, vector<8x1x4xbf16>,
    %cst_14 = arith.constant 0.000000e+00 : bf16
    %19 = vector.broadcast %cst_14 : bf16 to vector<8x1x4xbf16>
    %c1_15 = arith.constant 1 : index
    %c9_16 = arith.constant 9 : index
    %c0_17 = arith.constant 0 : index
    %20 = vector.load %arg5[%c1_15, %c9_16, %c0_17] : memref<10x10x4xbf16, #tpu.memory_space<vmem>>, vector<8x1x4xbf16>
    tpu.vector_store %arg5[%c1_15, %c9_16, %c0_17], %19 {strides = array<i32>} : memref<10x10x4xbf16, #tpu.memory_space<vmem>>, vector<8x1x4xbf16>,
    %c1_18 = arith.constant 1 : index
    %c1_19 = arith.constant 1 : index
    %c0_20 = arith.constant 0 : index
    %21 = vector.load %arg5[%c1_18, %c1_19, %c0_20] : memref<10x10x4xbf16, #tpu.memory_space<vmem>>, vector<8x8x4xbf16>
    tpu.vector_store %arg5[%c1_18, %c1_19, %c0_20], %12 {strides = array<i32>} : memref<10x10x4xbf16, #tpu.memory_space<vmem>>, vector<8x8x4xbf16>,
    %c0_21 = arith.constant 0 : index
    %c0_22 = arith.constant 0 : index
    %c0_23 = arith.constant 0 : index
    %22 = vector.load %arg5[%c0_21, %c0_22, %c0_23] : memref<10x10x4xbf16, #tpu.memory_space<vmem>>, vector<8x8x4xbf16>
    %23 = vector.shape_cast %22 : vector<8x8x4xbf16> to vector<64x4xbf16>
    %c0_24 = arith.constant 0 : index
    %c1_25 = arith.constant 1 : index
    %c0_26 = arith.constant 0 : index
    %24 = vector.load %arg5[%c0_24, %c1_25, %c0_26] : memref<10x10x4xbf16, #tpu.memory_space<vmem>>, vector<8x8x4xbf16>
    %25 = vector.shape_cast %24 : vector<8x8x4xbf16> to vector<64x4xbf16>
    %c0_27 = arith.constant 0 : index
    %c2 = arith.constant 2 : index
    %c0_28 = arith.constant 0 : index
    %26 = vector.load %arg5[%c0_27, %c2, %c0_28] : memref<10x10x4xbf16, #tpu.memory_space<vmem>>, vector<8x8x4xbf16>
    %27 = vector.shape_cast %26 : vector<8x8x4xbf16> to vector<64x4xbf16>
    %c1_29 = arith.constant 1 : index
    %c0_30 = arith.constant 0 : index
    %c0_31 = arith.constant 0 : index
    %28 = vector.load %arg5[%c1_29, %c0_30, %c0_31] : memref<10x10x4xbf16, #tpu.memory_space<vmem>>, vector<8x8x4xbf16>
    %29 = vector.shape_cast %28 : vector<8x8x4xbf16> to vector<64x4xbf16>
    %c1_32 = arith.constant 1 : index
    %c1_33 = arith.constant 1 : index
    %c0_34 = arith.constant 0 : index
    %30 = vector.load %arg5[%c1_32, %c1_33, %c0_34] : memref<10x10x4xbf16, #tpu.memory_space<vmem>>, vector<8x8x4xbf16>
    %31 = vector.shape_cast %30 : vector<8x8x4xbf16> to vector<64x4xbf16>
    %c1_35 = arith.constant 1 : index
    %c2_36 = arith.constant 2 : index
    %c0_37 = arith.constant 0 : index
    %32 = vector.load %arg5[%c1_35, %c2_36, %c0_37] : memref<10x10x4xbf16, #tpu.memory_space<vmem>>, vector<8x8x4xbf16>
    %33 = vector.shape_cast %32 : vector<8x8x4xbf16> to vector<64x4xbf16>
    %c2_38 = arith.constant 2 : index
    %c0_39 = arith.constant 0 : index
    %c0_40 = arith.constant 0 : index
    %34 = vector.load %arg5[%c2_38, %c0_39, %c0_40] : memref<10x10x4xbf16, #tpu.memory_space<vmem>>, vector<8x8x4xbf16>
    %35 = vector.shape_cast %34 : vector<8x8x4xbf16> to vector<64x4xbf16>
    %c2_41 = arith.constant 2 : index
    %c1_42 = arith.constant 1 : index
    %c0_43 = arith.constant 0 : index
    %36 = vector.load %arg5[%c2_41, %c1_42, %c0_43] : memref<10x10x4xbf16, #tpu.memory_space<vmem>>, vector<8x8x4xbf16>
    %37 = vector.shape_cast %36 : vector<8x8x4xbf16> to vector<64x4xbf16>
    %c2_44 = arith.constant 2 : index
    %c2_45 = arith.constant 2 : index
    %c0_46 = arith.constant 0 : index
    %38 = vector.load %arg5[%c2_44, %c2_45, %c0_46] : memref<10x10x4xbf16, #tpu.memory_space<vmem>>, vector<8x8x4xbf16>
    %39 = vector.shape_cast %38 : vector<8x8x4xbf16> to vector<64x4xbf16>
    %40 = tpu.concatenate %23, %25, %27, %29, %31, %33, %35, %37, %39 in 1 : vector<64x4xbf16>, vector<64x4xbf16>, vector<64x4xbf16>, vector<64x4xbf16>, vector<64x4xbf16>, vector<64x4xbf16>, vector<64x4xbf16>, vector<64x4xbf16>, vector<64x4xbf16> -> vector<64x36xbf16>
    %c0_47 = arith.constant 0 : index
    %c0_48 = arith.constant 0 : index
    %41 = vector.load %arg2[%c0_47, %c0_48] : memref<36x8xbf16, #tpu.memory_space<vmem>>, vector<36x8xbf16>
    %cst_49 = arith.constant dense<0.000000e+00> : vector<64x8xf32>
    %42 = tpu.matmul %40, %41, %cst_49 {dimension_numbers = #tpu.dot_dimension_numbers<[1], [0], [0], [1], [0, 0, 1, 1], [], []>} : vector<64x36xbf16>, vector<36x8xbf16>, vector<64x8xf32> -> vector<64x8xf32>
    %c0_50 = arith.constant 0 : index
    %c0_51 = arith.constant 0 : index
    %43 = vector.load %arg3[%c0_50, %c0_51] : memref<1x8xf32, #tpu.memory_space<vmem>>, vector<1x8xf32>
    %44 = vector.broadcast %43 : vector<1x8xf32> to vector<64x8xf32>
    %45 = arith.addf %42, %44 : vector<64x8xf32>
    %c0_52 = arith.constant 0 : index
    %c0_53 = arith.constant 0 : index
    %c0_54 = arith.constant 0 : index
    %46 = vector.load %arg4[%c0_52, %c0_53, %c0_54] : memref<1x64x8xf32, #tpu.memory_space<vmem>>, vector<1x64x8xf32>
    %47 = vector.shape_cast %46 : vector<1x64x8xf32> to vector<64x8xf32>
    %48 = vector.shape_cast %45 : vector<64x8xf32> to vector<1x64x8xf32>
    tpu.vector_store %arg4[%c0_52, %c0_53, %c0_54], %48 {strides = array<i32>} : memref<1x64x8xf32, #tpu.memory_space<vmem>>, vector<1x64x8xf32>,
    return
  }
  func.func @transform_0(%arg0: i32) -> (i32, i32, i32, i32, i32) {
    %c0_i32 = arith.constant 0 : i32
    %c0_i32_0 = arith.constant 0 : i32
    %c0_i32_1 = arith.constant 0 : i32
    %c0_i32_2 = arith.constant 0 : i32
    %c0_i32_3 = arith.constant 0 : i32
    return %arg0, %c0_i32, %c0_i32_0, %c0_i32_1, %c0_i32_2 : i32, i32, i32, i32, i32
  }
  func.func @transform_1(%arg0: i32) -> (i32, i32) {
    %c0_i32 = arith.constant 0 : i32
    %c0_i32_0 = arith.constant 0 : i32
    %c0_i32_1 = arith.constant 0 : i32
    return %c0_i32, %c0_i32_0 : i32, i32
  }
  func.func @transform_2(%arg0: i32) -> (i32, i32) {
    %c0_i32 = arith.constant 0 : i32
    %c0_i32_0 = arith.constant 0 : i32
    %c0_i32_1 = arith.constant 0 : i32
    return %c0_i32, %c0_i32_0 : i32, i32
  }
  func.func @transform_3(%arg0: i32) -> (i32, i32, i32) {
    %c0_i32 = arith.constant 0 : i32
    %c0_i32_0 = arith.constant 0 : i32
    %c0_i32_1 = arith.constant 0 : i32
    return %arg0, %c0_i32, %c0_i32_0 : i32, i32, i32
  }
}

</mosaic_0001>

<bundles_post_ra>
// kernel: mean_pool_conv.1
= control target key start
LH: loop header
LB: loop body
LE: loop exit
PB: predicated region body
PF: predicated region fallthrough
CT: control target
= control target key end

     0   :  { %s1664_s12 = smov 0   ;;  %s2300_s0 = inlined_call_operand.vmem [shape: f32[2,8,2,8,8], index: 0, kind: input, shape index: {}]   ;;  %s2301_s1 = inlined_call_operand.vmem [shape: bf16[36,8], index: 1, kind: input, shape index: {}]   ;;  %s2302_s2 = inlined_call_operand.vmem [shape: f32[1,8], index: 2, kind: input, shape index: {}]   ;;  %s2303_s3 = inlined_call_operand.vmem [shape: f32[2,64,8], index: 3, kind: output, shape index: {}]  }
   0x1 LB: > { %s1466_s13 = sadd.s32 4294967295, %s1632_s12   ;;  %p1470_p0 = scmp.ge.s32.totalorder %s1632_s12, 1  ;;  %s1632_s12 = sphi %s1664_s12, %s13_s12  }
   0x2   : > { %p137_p1 = scmp.lt.s32.totalorder %s1632_s12, 3 }
   0x4   : > { %p138_p2 = pnand %p1470_p0, %p137_p1 }
   0x6   : > { %141 = sbr.rel (%p138_p2) target bundleno = 568 (0x238), region = 32 }
   0xb   : > { %p161_p3 = scmp.lt.s32.totalorder %s1466_s13, 1  ;;  %vm252_vm0 = vcmask 27648   ;;  %vm254_vm1 = vcmask 24576   ;;  %v1634_v0 = vmov 0   ;;  %vm261_vm2 = vsmask.f32 256 }
   0xc   : > { %253 = vst.msk [vmem:[#allocation2] sm:$0xf] %vm252_vm0, %v1634_v0  ;;  %257 = vst.msk [vmem:[#allocation2 + $0x48] sm:$0xf] %vm252_vm0, %v1634_v0  ;;  %v275_v1 = vld [vmem:[#allocation2 + $0x28] sm:$0x1] }
   0xd   : > { %255 = vst.msk [vmem:[#allocation2 + $0x4] sm:$0x1] %vm254_vm1, %v1634_v0  ;;  %258 = vst.msk [vmem:[#allocation2 + $0x4c] sm:$0x1] %vm254_vm1, %v1634_v0  ;;  %vm287_vm3 = vsmask.f32 7938 }
   0xe   : > { %s2354_s13 = smov (!%p161_p3, %s1466_s13), 1  ;;  %vm1676_vm4 = vmand %vm254_vm1, %vm261_vm2  ;;  %v301_v3 = vld [vmem:[#allocation2 + $0x2c] sm:$0x1]  ;;  %v263_v4 = vld [vmem:[#allocation2 + $0x8] sm:$0x1]  ;;  %s1635_s18 = smov 124  }
   0xf   : > { %v276_v5 = vsel %vm1676_vm4, 0, %v275_v1  ;;  %vm1682_vm5 = vmand %vm254_vm1, %vm287_vm3  ;;  %v264_v7 = vsel %vm1676_vm4, 0, %v263_v4  ;;  %v289_v8 = vld [vmem:[#allocation2 + $0xc] sm:$0x1]  ;;  %v266_v9 = vld [vmem:[#allocation2 + $0x10] sm:$0x1] }
  0x10   : > { %s1553_s14 = sshll.u32 %s2354_s13, 7  ;;  %277 = vst [vmem:[#allocation2 + $0x28] sm:$0x1] %v276_v5  ;;  %v302_v10 = vsel %vm1682_vm5, 0, %v301_v3  ;;  %vm1692_vm6 = vmand %vm252_vm0, %vm287_vm3  ;;  %v290_v12 = vsel %vm1682_vm5, 0, %v289_v8  ;;  %v267_v13 = vsel %vm1676_vm4, 0, %v266_v9 }
  0x11   : > { %265 = vst [vmem:[#allocation2 + $0x8] sm:$0x1] %v264_v7  ;;  %v292_v14 = vld [vmem:[#allocation2 + $0x14] sm:$0x1]  ;;  %s1703_s17 = scalar_lea.vmem %s2300_s0, %s1553_s14  ;;  %303 = vst [vmem:[#allocation2 + $0x2c] sm:$0x1] %v302_v10 }
  0x12   : > { %291 = vst [vmem:[#allocation2 + $0xc] sm:$0x1] %v290_v12  ;;  %268 = vst [vmem:[#allocation2 + $0x10] sm:$0x1] %v267_v13  ;;  %v293_v15 = vsel %vm1682_vm5, 0, %v292_v14  ;;  %v180_v18 = vld [vmem:[%s1703_s17 + $0x40] sm:$0xff] }
  0x13   : > { %v272_v16 = vld [vmem:[#allocation2 + $0x20] sm:$0x1]  ;;  %v298_v17 = vld [vmem:[#allocation2 + $0x24] sm:$0x1]  ;;  %v181_v19 = vld [vmem:[%s1703_s17 + $0x48] sm:$0xff]  ;;  %vm622_vm7 = vcmask 1042432  }
  0x14   : > { %v172_v20 = vld [vmem:[%s1703_s17] sm:$0xff]  ;;  %294 = vst [vmem:[#allocation2 + $0x14] sm:$0x1] %v293_v15  ;;  %v273_v21 = vsel %vm1676_vm4, 0, %v272_v16  ;;  %v299_v22 = vsel %vm1682_vm5, 0, %v298_v17  ;;  %v1714_v23 = vadd.f32 %v181_v19, %v180_v18  ;;  %v173_v24 = vld [vmem:[%s1703_s17 + $0x8] sm:$0xff] }
  0x15   : > { %v174_v25 = vld [vmem:[%s1703_s17 + $0x10] sm:$0xff]  ;;  %v175_v26 = vld [vmem:[%s1703_s17 + $0x18] sm:$0xff]  ;;  %274 = vst [vmem:[#allocation2 + $0x20] sm:$0x1] %v273_v21  ;;  %300 = vst [vmem:[#allocation2 + $0x24] sm:$0x1] %v299_v22  ;;  %v188_v27 = vadd.f32 %v173_v24, %v172_v20 }
  0x16   : > { %v178_v28 = vld [vmem:[%s1703_s17 + $0x30] sm:$0xff]  ;;  %v179_v29 = vld [vmem:[%s1703_s17 + $0x38] sm:$0xff]  ;;  %212 = vrot.lane.b32.xlu1 %v1714_v23, %s1635_s18  ;;  %v1723_v30 = vadd.f32 %v175_v26, %v174_v25  ;;  %v176_v34 = vld [vmem:[%s1703_s17 + $0x20] sm:$0xff]  ;;  %vm623_vm8 = vcmask 1046532   ;;  %vm483_vm9 = vsmask.f32 3328 }
  0x17   : > { %204 = vrot.lane.b32.xlu0 %v188_v27, %s1635_s18  ;;  %v1726_v31 = vadd.f32 %v179_v29, %v178_v28  ;;  %v182_v32 = vld [vmem:[%s1703_s17 + $0x50] sm:$0xff]  ;;  %v183_v33 = vld [vmem:[%s1703_s17 + $0x58] sm:$0xff]  ;;  %v177_v35 = vld [vmem:[%s1703_s17 + $0x28] sm:$0xff]  ;;  %vm484_vm10 = vsmask.f32 7440  ;;  %s1636_s19 = smov 12  }
  0x18   : > { %v1734_v36 = vadd.f32 %v183_v33, %v182_v32  ;;  %v186_v37 = vld [vmem:[%s1703_s17 + $0x70] sm:$0xff]  ;;  %v1739_v40 = vadd.f32 %v177_v35, %v176_v34  ;;  %v187_v41 = vld [vmem:[%s1703_s17 + $0x78] sm:$0xff]  ;;  %v184_v42 = vld [vmem:[%s1703_s17 + $0x60] sm:$0xff]  ;;  %s1637_s20 = smov 24   ;;  %s1638_s21 = smov 8   ;;  %vm1334_vm13 = vcmask 1041408  }
  0x19   : > { %v278_v38 = vld [vmem:[#allocation2 + $0x30] sm:$0x1]  ;;  %v304_v39 = vld [vmem:[#allocation2 + $0x34] sm:$0x1]  ;;  %v185_v43 = vld [vmem:[%s1703_s17 + $0x68] sm:$0xff]  ;;  %v1756_v53 = vadd.f32 %v187_v41, %v186_v37  ;;  %s1639_s22 = smov 20  }
  0x1a   : > { %206 = vrot.lane.b32.xlu1 %v1723_v30, %s1635_s18  ;;  %v279_v44 = vsel %vm1676_vm4, 0, %v278_v38  ;;  %v305_v45 = vsel %vm1682_vm5, 0, %v304_v39  ;;  %v269_v46 = vld [vmem:[#allocation2 + $0x18] sm:$0x1]  ;;  %v295_v47 = vld [vmem:[#allocation2 + $0x1c] sm:$0x1]  ;;  %v1762_v57 = vadd.f32 %v185_v43, %v184_v42  ;;  %vm1808_vm11 = vmor %vm622_vm7, %vm623_vm8 }
  0x1b   : > { %210 = vrot.lane.b32.xlu0 %v1726_v31, %s1635_s18  ;;  %280 = vst [vmem:[#allocation2 + $0x30] sm:$0x1] %v279_v44  ;;  %306 = vst [vmem:[#allocation2 + $0x34] sm:$0x1] %v305_v45  ;;  %v284_v48 = vld [vmem:[#allocation2 + $0x40] sm:$0x1] }
  0x1c   : > { %v270_v49 = vsel %vm1676_vm4, 0, %v269_v46  ;;  %v296_v50 = vsel %vm1682_vm5, 0, %v295_v47  ;;  %v285_v51 = vsel %vm1676_vm4, 0, %v284_v48  ;;  %v310_v52 = vld [vmem:[#allocation2 + $0x44] sm:$0x1]  ;;  %vm1815_vm12 = vmor %vm483_vm9, %vm484_vm10  ;;  %s1640_s23 = smov 32  }
  0x1d   : > { %271 = vst [vmem:[#allocation2 + $0x18] sm:$0x1] %v270_v49  ;;  %297 = vst [vmem:[#allocation2 + $0x1c] sm:$0x1] %v296_v50  ;;  %v311_v54 = vsel %vm1682_vm5, 0, %v310_v52  ;;  %s1641_s24 = smov 4  }
  0x1e   : > { %214 = vrot.lane.b32.xlu1 %v1734_v36, %s1635_s18  ;;  %286 = vst [vmem:[#allocation2 + $0x40] sm:$0x1] %v285_v51  ;;  %v281_v55 = vld [vmem:[#allocation2 + $0x38] sm:$0x1]  ;;  %v307_v56 = vld [vmem:[#allocation2 + $0x3c] sm:$0x1] }
  0x1f   : > { %208 = vrot.lane.b32.xlu0 %v1739_v40, %s1635_s18  ;;  %312 = vst [vmem:[#allocation2 + $0x44] sm:$0x1] %v311_v54  ;;  %v282_v58 = vsel %vm1676_vm4, 0, %v281_v55  ;;  %v308_v59 = vsel %vm1682_vm5, 0, %v307_v56  ;;  %v467_v60 = vld [vmem:[#allocation2] sm:$0xf] }
  0x20   : > { %283 = vst [vmem:[#allocation2 + $0x38] sm:$0x1] %v282_v58  ;;  %309 = vst [vmem:[#allocation2 + $0x3c] sm:$0x1] %v308_v59  ;;  %v487_v61 = vshrl.u32 %v467_v60, 16  ;;  %v490_v62 = vshll.u32 %v467_v60, 16 }
  0x21   : > { %v1772_v63 = vld [vmem:[#allocation2 + $0x48] sm:$0xf]  ;;  %v1777_v9 = vld [vmem:[#allocation2] sm:$0xe]  ;;  %v1779_v12 = vld [vmem:[#allocation2 + $0x4] sm:$0x1] }
  0x22   : > { %218 = vrot.lane.b32.xlu1 %v1756_v53, %s1635_s18  ;;  %v489_v0 = vrot.slane %v487_v61, 4  ;;  %v492_v1 = vrot.slane %v490_v62, 5  ;;  %v957_v4 = vshrl.u32 %v1772_v63, 16  ;;  %v960_v5 = vshll.u32 %v1772_v63, 16  ;;  %v443_v35 = vld [vmem:[#allocation2 + $0x28] sm:$0xf] }
  0x23   : > { %216 = vrot.lane.b32.xlu0 %v1762_v57, %s1635_s18  ;;  %v496_v18 = vshll.u32 %v1779_v12, 16  ;;  %v1483_v22 = vrot.slane %v1777_v9, 9  ;;  %v627_v25 = vrot.slane %v1779_v12, 5  ;;  %v446_v42 = vld [vmem:[#allocation2 + $0x2c] sm:$0x1]  ;;  %s1642_s25 = smov 16  }
  0x24   : > { %v493_v13 = vor.u32 %v492_v1, %v489_v0  ;;  %v1781_v16 = vrot.slane %v957_v4, 4  ;;  %v1783_v17 = vrot.slane %v960_v5, 5  ;;  %v419_v43 = vld [vmem:[#allocation2 + $0x8] sm:$0xf]  ;;  %v422_v50 = vld [vmem:[#allocation2 + $0xc] sm:$0x1] }
  0x25   : > { %v1792_v34 = vrot.slane %v496_v18, 5  ;;  %v428_v4 = vld [vmem:[#allocation2 + $0x14] sm:$0x1]  ;;  %s1643_s26 = smov 28   ;;  %vm1222_vm14 = vcmask 31744   ;;  %vm1235_vm15 = vcmask 64512  }
  0x26   : > { %v1790_v28 = vrot.slane %v493_v13, 4  ;;  %v437_v13 = vld [vmem:[#allocation2 + $0x20] sm:$0xf]  ;;  %vm1244_vm0 = vcmask 97280   ;;  %vm1253_vm1 = vcmask 130048   ;;  %vm1262_vm2 = vcmask 162816  }
  0x27   : > { %vm1271_vm3 = vcmask 195584   ;;  %vm1289_vm5 = vcmask 261120   ;;  %s1554_s6 = sshll.u32 %s2354_s13, 6 }
  0x28   : > { %s170_s11 = scalar_lea.vmem %s2303_s3, %s1554_s6 }
  0x88   : > { %v213_v3 = vpop.permute.xlu1 %212 }
  0x89   : > { %v232_v6 = vadd.f32 %v213_v3, %v1714_v23  ;;  %v205_v7 = vpop.permute.xlu0 %204  ;;  %v425_v3 = vld [vmem:[#allocation2 + $0x10] sm:$0xf] }
  0x8a   : > { %v228_v8 = vadd.f32 %v205_v7, %v188_v27 }
  0x8b   : > { %v240_v10 = vmul.f32 0.25, %v232_v6 }
  0x8c   : > { %v236_v14 = vmul.f32 0.25, %v228_v8  ;;  %v207_v15 = vpop.permute.xlu1 %206 }
  0x8d   : > { %v1559_v19 = vpack.c.bf16 %v240_v10, %v240_v10  ;;  %v229_v20 = vadd.f32 %v207_v15, %v1723_v30  ;;  %v211_v21 = vpop.permute.xlu0 %210  ;;  %v963_v30 = vor.u32 %v1783_v17, %v1781_v16 }
  0x8e   : > { %v1555_v23 = vpack.c.bf16 %v236_v14, %v236_v14  ;;  %v231_v24 = vadd.f32 %v211_v21, %v1726_v31  ;;  %v440_v14 = vld [vmem:[#allocation2 + $0x24] sm:$0x1] }
  0x8f   : > { %v370_v26 = vshrl.u32 %v1559_v19, 16  ;;  %v237_v27 = vmul.f32 0.25, %v229_v20  ;;  %v373_v38 = vshll.u32 %v1559_v19, 16 }
  0x90   : > { %v338_v29 = vshrl.u32 %v1555_v23, 16  ;;  %v239_v32 = vmul.f32 0.25, %v231_v24  ;;  %v215_v33 = vpop.permute.xlu1 %214  ;;  %v341_v45 = vshll.u32 %v1555_v23, 16 }
  0x91   : > { %v372_v37 = vrot.slane %v370_v26, 7  ;;  %v1556_v31 = vpack.c.bf16 %v237_v27, %v237_v27  ;;  %v233_v39 = vadd.f32 %v215_v33, %v1734_v36  ;;  %v209_v41 = vpop.permute.xlu0 %208  ;;  %v449_v33 = vld [vmem:[#allocation2 + $0x30] sm:$0xf] }
  0x92   : > { %v340_v44 = vrot.slane %v338_v29, 7  ;;  %v1558_v46 = vpack.c.bf16 %v239_v32, %v239_v32  ;;  %v230_v47 = vadd.f32 %v209_v41, %v1739_v40 }
  0x93   : > { %v375_v48 = vor.u32 %v373_v38, %v372_v37  ;;  %v376_v49 = vrot.slane %v372_v37, 4  ;;  %v346_v51 = vshrl.u32 %v1556_v31, 16  ;;  %v349_v52 = vshll.u32 %v1556_v31, 16  ;;  %v1840_v31 = vld [vmem:[#allocation2 + $0x4c] sm:$0x1] }
  0x94   : > { %v343_v54 = vor.u32 %v341_v45, %v340_v44  ;;  %v344_v55 = vrot.slane %v340_v44, 4  ;;  %v362_v56 = vshrl.u32 %v1558_v46, 16  ;;  %v365_v58 = vshll.u32 %v1558_v46, 16  ;;  %v219_v59 = vpop.permute.xlu1 %218  ;;  %2319 = vst [vmem:[#allocation3_spill] sm:$0xff] %v1840_v31 }
  0x95   : > { %v444_v36 = vsel %vm1692_vm6, %v375_v48, %v443_v35  ;;  %v447_v60 = vsel %vm1676_vm4, %v376_v49, %v446_v42  ;;  %v348_v61 = vrot.slane %v346_v51, 7  ;;  %v241_v62 = vmul.f32 0.25, %v233_v39  ;;  %v217_v0 = vpop.permute.xlu0 %216  ;;  %v452_v35 = vld [vmem:[#allocation2 + $0x34] sm:$0x1]  ;;  %v431_v39 = vld [vmem:[#allocation2 + $0x18] sm:$0xf] }
  0x96   : > { %445 = vst [vmem:[#allocation2 + $0x28] sm:$0xf] %v444_v36  ;;  %448 = vst [vmem:[#allocation2 + $0x2c] sm:$0x1] %v447_v60  ;;  %v420_v40 = vsel %vm1692_vm6, %v343_v54, %v419_v43  ;;  %v423_v1 = vsel %vm1676_vm4, %v344_v55, %v422_v50  ;;  %v364_v5 = vrot.slane %v362_v56, 7  ;;  %v238_v6 = vmul.f32 0.25, %v230_v47 }
  0x97   : > { %421 = vst [vmem:[#allocation2 + $0x8] sm:$0xf] %v420_v40  ;;  %424 = vst [vmem:[#allocation2 + $0xc] sm:$0x1] %v423_v1  ;;  %v351_v8 = vor.u32 %v349_v52, %v348_v61  ;;  %v352_v10 = vrot.slane %v348_v61, 4  ;;  %v1560_v15 = vpack.c.bf16 %v241_v62, %v241_v62  ;;  %v235_v18 = vadd.f32 %v219_v59, %v1756_v53 }
  0x98   : > { %v367_v20 = vor.u32 %v365_v58, %v364_v5  ;;  %v368_v21 = vrot.slane %v364_v5, 4  ;;  %v1557_v23 = vpack.c.bf16 %v238_v6, %v238_v6  ;;  %v234_v24 = vadd.f32 %v217_v0, %v1762_v57  ;;  %v434_v47 = vld [vmem:[#allocation2 + $0x1c] sm:$0x1]  ;;  %v461_v60 = vld [vmem:[#allocation2 + $0x40] sm:$0xf] }
  0x99   : > { %v426_v26 = vsel %vm1692_vm6, %v351_v8, %v425_v3  ;;  %v429_v27 = vsel %vm1676_vm4, %v352_v10, %v428_v4  ;;  %v378_v29 = vshrl.u32 %v1560_v15, 16  ;;  %v1830_v53 = vsel %vm1808_vm11, %v1483_v22, %v627_v25  ;;  %v464_v61 = vld [vmem:[#allocation2 + $0x44] sm:$0x1]  ;;  %v455_v1 = vld [vmem:[#allocation2 + $0x38] sm:$0xf] }
  0x9a   : > { %427 = vst [vmem:[#allocation2 + $0x10] sm:$0xf] %v426_v26  ;;  %430 = vst [vmem:[#allocation2 + $0x14] sm:$0x1] %v429_v27  ;;  %v438_v57 = vsel %vm1692_vm6, %v367_v20, %v437_v13  ;;  %v441_v32 = vsel %vm1676_vm4, %v368_v21, %v440_v14  ;;  %v354_v37 = vshrl.u32 %v1557_v23, 16  ;;  %v381_v22 = vshll.u32 %v1560_v15, 16 }
  0x9b   : > { %439 = vst [vmem:[#allocation2 + $0x20] sm:$0xf] %v438_v57  ;;  %442 = vst [vmem:[#allocation2 + $0x24] sm:$0x1] %v441_v32  ;;  %v380_v12 = vrot.slane %v378_v29, 7  ;;  %v243_v25 = vmul.f32 0.25, %v235_v18 }
  0x9c   : > { %v242_v38 = vmul.f32 0.25, %v234_v24  ;;  %v356_v41 = vrot.slane %v354_v37, 7  ;;  %v357_v42 = vshll.u32 %v1557_v23, 16  ;;  %v1845_v43 = vrot.slane %v963_v30, 4  ;;  %v458_v3 = vld [vmem:[#allocation2 + $0x3c] sm:$0x1] }
  0x9d   : > { %v383_v45 = vor.u32 %v381_v22, %v380_v12  ;;  %v384_v46 = vrot.slane %v380_v12, 4  ;;  %v1562_v48 = vpack.c.bf16 %v243_v25, %v243_v25  ;;  %v1848_v50 = vld [vmem:[#allocation2 + $0x28] sm:$0xf]  ;;  %v2005_v31 = vld [vmem:[#allocation2 + $0x2c] sm:$0x1] }
  0x9e   : > { %2320 = vst [vmem:[#allocation4_spill] sm:$0xff] %v1845_v43  ;;  %v1561_v49 = vpack.c.bf16 %v242_v38, %v242_v38  ;;  %v359_v51 = vor.u32 %v357_v42, %v356_v41  ;;  %v360_v52 = vrot.slane %v356_v41, 4  ;;  %v657_v54 = vld [vmem:[#allocation2 + $0x8] sm:$0xf]  ;;  %v730_v55 = vshrl.u32 %v1848_v50, 16 }
  0x9f   : > { %v733_v56 = vshll.u32 %v1848_v50, 16  ;;  %v450_v16 = vsel %vm1692_vm6, %v383_v45, %v449_v33  ;;  %v453_v17 = vsel %vm1676_vm4, %v384_v46, %v452_v35  ;;  %v394_v30 = vshrl.u32 %v1562_v48, 16 }
  0xa0   : > { %v397_v58 = vshll.u32 %v1562_v48, 16  ;;  %451 = vst [vmem:[#allocation2 + $0x30] sm:$0xf] %v450_v16  ;;  %454 = vst [vmem:[#allocation2 + $0x34] sm:$0x1] %v453_v17  ;;  %v432_v59 = vsel %vm1692_vm6, %v359_v51, %v431_v39  ;;  %v435_v36 = vsel %vm1676_vm4, %v360_v52, %v434_v47  ;;  %v386_v62 = vshrl.u32 %v1561_v49, 16 }
  0xa1   : > { %v389_v0 = vshll.u32 %v1561_v49, 16  ;;  %433 = vst [vmem:[#allocation2 + $0x18] sm:$0xf] %v432_v59  ;;  %436 = vst [vmem:[#allocation2 + $0x1c] sm:$0x1] %v435_v36  ;;  %v396_v40 = vrot.slane %v394_v30, 7 }
  0xa2   : > { %v658_v4 = vld [vmem:[#allocation2 + $0x10] sm:$0xf]  ;;  %v674_v5 = vshrl.u32 %v657_v54, 16  ;;  %v677_v6 = vshll.u32 %v657_v54, 16  ;;  %v1860_v8 = vrot.slane %v730_v55, 4  ;;  %v388_v10 = vrot.slane %v386_v62, 7 }
  0xa3   : > { %v688_v13 = vshrl.u32 %v658_v4, 16  ;;  %v691_v14 = vshll.u32 %v658_v4, 16  ;;  %v1519_v15 = vcombine.low %v657_v54, %v658_v4  ;;  %v660_v18 = vld [vmem:[#allocation2 + $0x20] sm:$0xf]  ;;  %v399_v20 = vor.u32 %v397_v58, %v396_v40  ;;  %v1866_v26 = vld [vmem:[#allocation2 + $0x10] sm:$0xf] }
  0xa4   : > { %v400_v21 = vrot.slane %v396_v40, 4  ;;  %v1862_v23 = vrot.slane %v674_v5, 4  ;;  %v1864_v24 = vrot.slane %v677_v6, 5  ;;  %v391_v27 = vor.u32 %v389_v0, %v388_v10  ;;  %v1873_v33 = vld [vmem:[#allocation2 + $0x20] sm:$0xf] }
  0xa5   : > { %v392_v29 = vrot.slane %v388_v10, 4  ;;  %v1868_v57 = vrot.slane %v688_v13, 4  ;;  %v1870_v32 = vrot.slane %v691_v14, 5  ;;  %1106 = vrot.lane.b32.xlu0 %v1519_v15, %s1636_s19  ;;  %v462_v35 = vsel %vm1692_vm6, %v399_v20, %v461_v60  ;;  %v1889_v47 = vld [vmem:[#allocation2 + $0x28] sm:$0xf] }
  0xa6   : > { %v465_v37 = vsel %vm1676_vm4, %v400_v21, %v464_v61  ;;  %v1879_v12 = vrot.slane %v733_v56, 5  ;;  %v716_v22 = vshrl.u32 %v660_v18, 16  ;;  %463 = vst [vmem:[#allocation2 + $0x40] sm:$0xf] %v462_v35  ;;  %v456_v25 = vsel %vm1692_vm6, %v391_v27, %v455_v1  ;;  %v599_v20 = vld [vmem:[#allocation2 + $0x8] sm:$0xe] }
  0xa7   : > { %466 = vst [vmem:[#allocation2 + $0x44] sm:$0x1] %v465_v37  ;;  %v459_v38 = vsel %vm1676_vm4, %v392_v29, %v458_v3  ;;  %v719_v39 = vshll.u32 %v660_v18, 16  ;;  %v859_v41 = vshrl.u32 %v1866_v26, 16  ;;  %457 = vst [vmem:[#allocation2 + $0x38] sm:$0xf] %v456_v25  ;;  %v1532_v14 = vcombine.low %v1873_v33, %v1889_v47 }
  0xa8   : > { %460 = vst [vmem:[#allocation2 + $0x3c] sm:$0x1] %v459_v38  ;;  %v662_v42 = vld [vmem:[#allocation2 + $0x30] sm:$0xf]  ;;  %v1886_v45 = vrot.slane %v716_v22, 4  ;;  %v862_v46 = vshll.u32 %v1866_v26, 16 }
  0xa9   : > { %v887_v48 = vshrl.u32 %v1873_v33, 16  ;;  %v890_v11 = vshll.u32 %v1873_v33, 16  ;;  %v1521_v49 = vcombine.low %v1848_v50, %v662_v42  ;;  %v744_v2 = vshrl.u32 %v662_v42, 16  ;;  %v659_v52 = vld [vmem:[#allocation2 + $0x18] sm:$0xf] }
  0xaa   : > { %v747_v51 = vshll.u32 %v662_v42, 16  ;;  %v1894_v54 = vrot.slane %v719_v39, 5  ;;  %v1520_v55 = vcombine.low %v659_v52, %v660_v18  ;;  %v702_v56 = vshrl.u32 %v659_v52, 16  ;;  %v843_v17 = vld [vmem:[#allocation2 + $0x18] sm:$0xf] }
  0xab   : > { %v705_v16 = vshll.u32 %v659_v52, 16  ;;  %v1896_v30 = vrot.slane %v859_v41, 4  ;;  %1110 = vrot.lane.b32.xlu1 %v1521_v49, %s1636_s19  ;;  %v1899_v58 = vrot.slane %v744_v2, 4  ;;  %v1903_v36 = vrot.slane %v862_v46, 5  ;;  %v1905_v60 = vld [vmem:[#allocation2 + $0x30] sm:$0xf] }
  0xac   : > { %v1901_v59 = vrot.slane %v747_v51, 5  ;;  %v873_v50 = vshrl.u32 %v843_v17, 16  ;;  %1108 = vrot.lane.b32.xlu0 %v1520_v55, %s1636_s19  ;;  %v1908_v61 = vrot.slane %v702_v56, 4  ;;  %v876_v0 = vshll.u32 %v843_v17, 16  ;;  %v1926_v18 = vld [vmem:[#allocation2 + $0xc] sm:$0x1] }
  0xad   : > { %v1910_v62 = vrot.slane %v705_v16, 5  ;;  %v1531_v40 = vcombine.low %v1866_v26, %v843_v17  ;;  %v1915_v3 = vrot.slane %v887_v48, 4  ;;  %v1917_v4 = vrot.slane %v890_v11, 5  ;;  %v664_v10 = vld [vmem:[#allocation2 + $0x40] sm:$0xf] }
  0xae   : > { %v1913_v1 = vrot.slane %v873_v50, 4  ;;  %v901_v5 = vshrl.u32 %v1889_v47, 16  ;;  %v1920_v6 = vrot.slane %v876_v0, 5  ;;  %v904_v13 = vshll.u32 %v1889_v47, 16  ;;  %v663_v21 = vld [vmem:[#allocation2 + $0x38] sm:$0xf] }
  0xaf   : > { %2321 = vst [vmem:[#allocation5_spill] sm:$0xff] %v1915_v3  ;;  %2322 = vst [vmem:[#allocation6_spill] sm:$0xff] %v1917_v4  ;;  %v915_v15 = vshrl.u32 %v1905_v60, 16  ;;  %v772_v26 = vshrl.u32 %v664_v10, 16  ;;  %v775_v27 = vshll.u32 %v664_v10, 16  ;;  %v918_v35 = vshll.u32 %v1905_v60, 16 }
  0xb0   : > { %v1928_v29 = vrot.slane %v901_v5, 4  ;;  %1174 = vrot.lane.b32.xlu0 %v1531_v40, %s1637_s20  ;;  %v1522_v37 = vcombine.low %v663_v21, %v664_v10  ;;  %v758_v22 = vshrl.u32 %v663_v21, 16  ;;  %v761_v25 = vshll.u32 %v663_v21, 16  ;;  %v847_v33 = vld [vmem:[#allocation2 + $0x38] sm:$0xf] }
  0xb1   : > { %v1932_v38 = vrot.slane %v904_v13, 5  ;;  %v1934_v39 = vld [vmem:[#allocation2 + $0x14] sm:$0x1]  ;;  %v600_v41 = vld [vmem:[#allocation2 + $0x10] sm:$0xe]  ;;  %v1936_v42 = vrot.slane %v772_v26, 4  ;;  %v1533_v0 = vcombine.low %v1905_v60, %v847_v33 }
  0xb2   : > { %2323 = vst [vmem:[#allocation7_spill] sm:$0xff] %v1928_v29  ;;  %v1938_v46 = vrot.slane %v775_v27, 5  ;;  %v1940_v47 = vrot.slane %v915_v15, 4  ;;  %v1942_v48 = vrot.slane %v918_v35, 5  ;;  %v848_v11 = vld [vmem:[#allocation2 + $0x40] sm:$0xf]  ;;  %1112 = vrot.lane.b32.xlu1 %v1522_v37, %s1636_s19 }
  0xb3   : > { %2324 = vst [vmem:[#allocation8_spill] sm:$0xff] %v1932_v38  ;;  %v1944_v49 = vld [vmem:[#allocation2 + $0x1c] sm:$0x1]  ;;  %v1947_v2 = vrot.slane %v758_v22, 4  ;;  %v1949_v51 = vrot.slane %v761_v25, 5  ;;  %v929_v52 = vshrl.u32 %v847_v33, 16  ;;  %v1534_v35 = vcombine.low %v848_v11, %v1772_v63 }
  0xb4   : > { %2325 = vst [vmem:[#allocation9_spill] sm:$0xff] %v1940_v47  ;;  %2326 = vst [vmem:[#allocation10_spill] sm:$0xff] %v1942_v48  ;;  %v932_v55 = vshll.u32 %v847_v33, 16  ;;  %v601_v56 = vld [vmem:[#allocation2 + $0x18] sm:$0xe]  ;;  %v1484_v40 = vrot.slane %v599_v20, 9  ;;  %1176 = vrot.lane.b32.xlu0 %v1532_v14, %s1637_s20 }
  0xb5   : > { %v1951_v16 = vld [vmem:[#allocation2 + $0x24] sm:$0x1]  ;;  %v602_v17 = vld [vmem:[#allocation2 + $0x20] sm:$0xe]  ;;  %v603_v50 = vld [vmem:[#allocation2 + $0x28] sm:$0xe] }
  0xb6   : > { %v631_v5 = vrot.slane %v1926_v18, 5  ;;  %v943_v10 = vshrl.u32 %v848_v11, 16  ;;  %v1955_v13 = vld [vmem:[#allocation2 + $0x2c] sm:$0x1]  ;;  %v1960_v21 = vrot.slane %v929_v52, 4  ;;  %v1962_v26 = vrot.slane %v932_v55, 5  ;;  %1178 = vrot.lane.b32.xlu1 %v1533_v0, %s1637_s20 }
  0xb7   : > { %v1957_v15 = vld [vmem:[#allocation2 + $0xc] sm:$0x1]  ;;  %v946_v27 = vshll.u32 %v848_v11, 16  ;;  %v1965_v37 = vld [vmem:[#allocation2 + $0x14] sm:$0x1]  ;;  %v1485_v25 = vrot.slane %v600_v41, 9 }
  0xb8   : > { %2327 = vst [vmem:[#allocation11_spill] sm:$0xff] %v1960_v21  ;;  %2328 = vst [vmem:[#allocation12_spill] sm:$0xff] %v1962_v26  ;;  %v785_v60 = vld [vmem:[#allocation2 + $0x8] sm:$0xe]  ;;  %v632_v20 = vsel %vm1808_vm11, %v1484_v40, %v631_v5  ;;  %v1969_v22 = vrot.slane %v943_v10, 4  ;;  %v635_v33 = vrot.slane %v1934_v39, 5 }
  0xb9   : > { %v786_v44 = vld [vmem:[#allocation2 + $0x10] sm:$0xe]  ;;  %v1515_v14 = vcombine.low %v1830_v53, %v632_v20  ;;  %v1974_v52 = vrot.slane %v946_v27, 5  ;;  %v1486_v55 = vrot.slane %v601_v56, 9  ;;  %v639_v63 = vrot.slane %v1944_v49, 5 }
  0xba   : > { %2329 = vst [vmem:[#allocation13_spill] sm:$0xff] %v1969_v22  ;;  %v1977_v11 = vld [vmem:[#allocation2 + $0x34] sm:$0x1]  ;;  %v636_v40 = vsel %vm1808_vm11, %v1485_v25, %v635_v33  ;;  %v1487_v5 = vrot.slane %v602_v17, 9  ;;  %v643_v41 = vrot.slane %v1951_v16, 5  ;;  %v1488_v10 = vrot.slane %v603_v50, 9  ;;  %1180 = vrot.lane.b32.xlu1 %v1534_v35, %s1637_s20 }
  0xbb   : > { %2330 = vst [vmem:[#allocation14_spill] sm:$0xff] %v1974_v52  ;;  %v1982_v9 = vld [vmem:[#allocation2 + $0x3c] sm:$0x1]  ;;  %1078 = vrot.lane.b32.xlu0 %v1515_v14, %s1638_s21  ;;  %v640_v53 = vsel %vm1808_vm11, %v1486_v55, %v639_v63  ;;  %v647_v56 = vrot.slane %v1955_v13, 5  ;;  %v1491_v0 = vrot.slane %v785_v60, 9  ;;  %v811_v27 = vrot.slane %v1957_v15, 5 }
  0xbc   : > { %v604_v20 = vld [vmem:[#allocation2 + $0x30] sm:$0xe]  ;;  %v1516_v43 = vcombine.low %v636_v40, %v640_v53  ;;  %v644_v17 = vsel %vm1808_vm11, %v1487_v5, %v643_v41  ;;  %v1492_v25 = vrot.slane %v786_v44, 9  ;;  %v815_v50 = vrot.slane %v1965_v37, 5  ;;  %v605_v33 = vld [vmem:[#allocation2 + $0x38] sm:$0xe] }
  0xbd   : > { %v1992_v52 = vld [vmem:[#allocation2 + $0x1c] sm:$0x1]  ;;  %v648_v14 = vsel %vm1808_vm11, %v1488_v10, %v647_v56  ;;  %v812_v60 = vsel %vm1808_vm11, %v1491_v0, %v811_v27  ;;  %v1489_v55 = vrot.slane %v604_v20, 9  ;;  %v651_v63 = vrot.slane %v1977_v11, 5  ;;  %v2000_v40 = vld [vmem:[#allocation2 + $0x24] sm:$0x1] }
  0xbe   : > { %v787_v5 = vld [vmem:[#allocation2 + $0x18] sm:$0xe]  ;;  %v1517_v44 = vcombine.low %v644_v17, %v648_v14  ;;  %v816_v41 = vsel %vm1808_vm11, %v1492_v25, %v815_v50  ;;  %v1490_v53 = vrot.slane %v605_v33, 9  ;;  %v655_v22 = vrot.slane %v1982_v9, 5  ;;  %v788_v35 = vld [vmem:[#allocation2 + $0x20] sm:$0xe] }
  0xbf   : > { %1080 = vrot.lane.b32.xlu0 %v1516_v43, %s1638_s21  ;;  %v1527_v10 = vcombine.low %v812_v60, %v816_v41  ;;  %v652_v56 = vsel %vm1808_vm11, %v1489_v55, %v651_v63  ;;  %v1493_v0 = vrot.slane %v787_v5, 9  ;;  %v819_v27 = vrot.slane %v1992_v52, 5  ;;  %v2011_v20 = vld [vmem:[#allocation2 + $0x34] sm:$0x1]  ;;  %v789_v17 = vld [vmem:[#allocation2 + $0x28] sm:$0xe] }
  0xc0   : > { %v656_v25 = vsel %vm1808_vm11, %v1490_v53, %v655_v22  ;;  %v1494_v50 = vrot.slane %v788_v35, 9  ;;  %v823_v33 = vrot.slane %v2000_v40, 5  ;;  %v790_v14 = vld [vmem:[#allocation2 + $0x30] sm:$0xe]  ;;  %v1495_v26 = vrot.slane %v789_v17, 9  ;;  %1082 = vrot.lane.b32.xlu1 %v1517_v44, %s1638_s21 }
  0xc1   : > { %v1518_v43 = vcombine.low %v652_v56, %v656_v25  ;;  %v820_v60 = vsel %vm1808_vm11, %v1493_v0, %v819_v27  ;;  %v827_v55 = vrot.slane %v2005_v31, 5  ;;  %v1496_v63 = vrot.slane %v790_v14, 9  ;;  %v2020_v5 = vld [vmem:[#allocation2 + $0x14] sm:$0x1]  ;;  %v2022_v41 = vld [vmem:[#allocation2 + $0x1c] sm:$0x1] }
  0xc2   : > { %v824_v22 = vsel %vm1808_vm11, %v1494_v50, %v823_v33  ;;  %v831_v53 = vrot.slane %v2011_v20, 5  ;;  %v970_v35 = vld [vmem:[#allocation2 + $0x10] sm:$0xe]  ;;  %v971_v17 = vld [vmem:[#allocation2 + $0x18] sm:$0xe]  ;;  %v996_v44 = vrot.slane %v2020_v5, 5 }
  0xc3   : > { %1146 = vrot.lane.b32.xlu0 %v1527_v10, %s1639_s22  ;;  %v1528_v0 = vcombine.low %v820_v60, %v824_v22  ;;  %v828_v27 = vsel %vm1808_vm11, %v1495_v26, %v827_v55  ;;  %v1499_v25 = vrot.slane %v970_v35, 9  ;;  %v1500_v14 = vrot.slane %v971_v17, 9  ;;  %v2033_v21 = vld [vmem:[#allocation2 + $0x3c] sm:$0x1]  ;;  %v2035_v50 = vld [vmem:[#allocation2 + $0x44] sm:$0x1] }
  0xc4   : > { %v832_v33 = vsel %vm1808_vm11, %v1496_v63, %v831_v53  ;;  %v1000_v48 = vrot.slane %v2022_v41, 5  ;;  %v791_v47 = vld [vmem:[#allocation2 + $0x38] sm:$0xe]  ;;  %v792_v56 = vld [vmem:[#allocation2 + $0x40] sm:$0xe]  ;;  %v835_v38 = vrot.slane %v2033_v21, 5  ;;  %1084 = vrot.lane.b32.xlu1 %v1518_v43, %s1638_s21 }
  0xc5   : > { %v1529_v26 = vcombine.low %v828_v27, %v832_v33  ;;  %v997_v60 = vsel %vm1808_vm11, %v1499_v25, %v996_v44  ;;  %v1497_v55 = vrot.slane %v791_v47, 9  ;;  %v1498_v22 = vrot.slane %v792_v56, 9  ;;  %v2046_v35 = vld [vmem:[#allocation2 + $0x8] sm:$0xf]  ;;  %v2048_v63 = vld [vmem:[#allocation2 + $0x34] sm:$0x1] }
  0xc6   : > { %2331 = vst [vmem:[#allocation15_spill] sm:$0xff] %v2046_v35  ;;  %2332 = vst [vmem:[#allocation16_spill] sm:$0xff] %v2048_v63  ;;  %v1001_v53 = vsel %vm1808_vm11, %v1500_v14, %v1000_v48  ;;  %v839_v17 = vrot.slane %v2035_v50, 5  ;;  %v501_v29 = vshrl.u32 %v2046_v35, 16  ;;  %v504_v10 = vshll.u32 %v2046_v35, 16 }
  0xc7   : > { %v2055_v43 = vld [vmem:[#allocation2 + $0x3c] sm:$0x1]  ;;  %1148 = vrot.lane.b32.xlu0 %v1528_v0, %s1639_s22  ;;  %v1539_v44 = vcombine.low %v997_v60, %v1001_v53  ;;  %v836_v47 = vsel %vm1808_vm11, %v1497_v55, %v835_v38  ;;  %v510_v56 = vshll.u32 %v1926_v18, 16  ;;  %v974_v27 = vld [vmem:[#allocation2 + $0x30] sm:$0xe]  ;;  %v1012_v48 = vrot.slane %v2048_v63, 5 }
  0xc8   : > { %v975_v25 = vld [vmem:[#allocation2 + $0x38] sm:$0xe]  ;;  %v840_v14 = vsel %vm1808_vm11, %v1498_v22, %v839_v17  ;;  %v503_v33 = vrot.slane %v501_v29, 4  ;;  %v506_v4 = vrot.slane %v504_v10, 5  ;;  %v1503_v35 = vrot.slane %v974_v27, 9  ;;  %1150 = vrot.lane.b32.xlu1 %v1529_v26, %s1639_s22 }
  0xc9   : > { %v2064_v3 = vld [vmem:[#allocation2 + $0x10] sm:$0xf]  ;;  %v1530_v0 = vcombine.low %v836_v47, %v840_v14  ;;  %v512_v60 = vrot.slane %v510_v56, 5  ;;  %v1504_v53 = vrot.slane %v975_v25, 9  ;;  %v1016_v38 = vrot.slane %v2055_v43, 5 }
  0xca   : > { %2333 = vst [vmem:[#allocation17_spill] sm:$0xff] %v2064_v3  ;;  %v2068_v18 = vld [vmem:[#allocation2 + $0x18] sm:$0xf]  ;;  %v507_v55 = vor.u32 %v506_v4, %v503_v33  ;;  %v1013_v63 = vsel %vm1808_vm11, %v1503_v35, %v1012_v48  ;;  %v515_v22 = vshrl.u32 %v2064_v3, 16  ;;  %v518_v29 = vshll.u32 %v2064_v3, 16 }
  0xcb   : > { %1214 = vrot.lane.b32.xlu0 %v1539_v44, %s1640_s23  ;;  %v1017_v10 = vsel %vm1808_vm11, %v1504_v53, %v1016_v38  ;;  %v524_v26 = vshll.u32 %v1934_v39, 16  ;;  %v529_v17 = vshrl.u32 %v2068_v18, 16  ;;  %v532_v47 = vshll.u32 %v2068_v18, 16  ;;  %v2080_v4 = vld [vmem:[#allocation2 + $0x20] sm:$0xf] }
  0xcc   : > { %v508_v56 = vrot.slane %v507_v55, 4  ;;  %v1541_v35 = vcombine.low %v1013_v63, %v1017_v10  ;;  %v517_v27 = vrot.slane %v515_v22, 4  ;;  %v520_v25 = vrot.slane %v518_v29, 5  ;;  %1152 = vrot.lane.b32.xlu1 %v1530_v0, %s1639_s22  ;;  %v2084_v53 = vld [vmem:[#allocation2 + $0x28] sm:$0xf] }
  0xcd   : > { %v526_v48 = vrot.slane %v524_v26, 5  ;;  %v531_v14 = vrot.slane %v529_v17, 4  ;;  %v534_v44 = vrot.slane %v532_v47, 5  ;;  %v538_v33 = vshll.u32 %v1944_v49, 16 }
  0xce   : > { %v513_v39 = vsel %vm1815_vm12, %v508_v56, %v512_v60  ;;  %v521_v38 = vor.u32 %v520_v25, %v517_v27  ;;  %v543_v3 = vshrl.u32 %v2080_v4, 16  ;;  %v546_v55 = vshll.u32 %v2080_v4, 16 }
  0xcf   : > { %v2334_v63 = vsel %vm1815_vm12, %v1790_v28, %v1792_v34  ;;  %v535_v22 = vor.u32 %v534_v44, %v531_v14  ;;  %v540_v29 = vrot.slane %v538_v33, 5  ;;  %v552_v49 = vshll.u32 %v1951_v16, 16  ;;  %v2106_v44 = vld [vmem:[#allocation2 + $0x30] sm:$0xf] }
  0xd0   : > { %v1511_v0 = vcombine.low %v2334_v63, %v513_v39  ;;  %v522_v10 = vrot.slane %v521_v38, 4  ;;  %v545_v26 = vrot.slane %v543_v3, 4  ;;  %v548_v17 = vrot.slane %v546_v55, 5  ;;  %1218 = vrot.lane.b32.xlu1 %v1541_v35, %s1640_s23  ;;  %v2111_v55 = vld [vmem:[#allocation2 + $0x38] sm:$0xf] }
  0xd1   : > { %v557_v60 = vshrl.u32 %v2084_v53, 16  ;;  %v536_v47 = vrot.slane %v535_v22, 4  ;;  %v554_v56 = vrot.slane %v552_v49, 5  ;;  %v560_v27 = vshll.u32 %v2084_v53, 16 }
  0xd2   : > { %1058 = vrot.lane.b32.xlu0 %v1511_v0, %s1641_s24  ;;  %v566_v28 = vshll.u32 %v1955_v13, 16  ;;  %v527_v34 = vsel %vm1815_vm12, %v522_v10, %v526_v48  ;;  %v549_v16 = vor.u32 %v548_v17, %v545_v26  ;;  %v2335_v3 = vor.u32 %v1864_v24, %v1862_v23 }
  0xd3   : > { %v559_v25 = vrot.slane %v557_v60, 4  ;;  %v541_v35 = vsel %vm1815_vm12, %v536_v47, %v540_v29  ;;  %v562_v33 = vrot.slane %v560_v27, 5  ;;  %v683_v38 = vshll.u32 %v1957_v15, 16 }
  0xd4   : > { %v681_v14 = vrot.slane %v2335_v3, 4  ;;  %v568_v39 = vrot.slane %v566_v28, 5  ;;  %v1512_v13 = vcombine.low %v527_v34, %v541_v35  ;;  %v550_v63 = vrot.slane %v549_v16, 4 }
  0xd5   : > { %v2336_v48 = vor.u32 %v1870_v32, %v1868_v57  ;;  %v697_v23 = vshll.u32 %v1965_v37, 16  ;;  %v563_v24 = vor.u32 %v562_v33, %v559_v25  ;;  %v685_v22 = vrot.slane %v683_v38, 5 }
  0xd6   : > { %v571_v49 = vshrl.u32 %v2106_v44, 16  ;;  %v574_v29 = vshll.u32 %v2106_v44, 16  ;;  %1060 = vrot.lane.b32.xlu0 %v1512_v13, %s1641_s24  ;;  %v555_v15 = vsel %vm1815_vm12, %v550_v63, %v554_v56  ;;  %v580_v26 = vshll.u32 %v1977_v11, 16 }
  0xd7   : > { %v695_v0 = vrot.slane %v2336_v48, 4  ;;  %v699_v10 = vrot.slane %v697_v23, 5  ;;  %v585_v17 = vshrl.u32 %v2111_v55, 16  ;;  %v564_v57 = vrot.slane %v563_v24, 4 }
  0xd8   : > { %v686_v32 = vsel %vm1815_vm12, %v681_v14, %v685_v22  ;;  %v573_v37 = vrot.slane %v571_v49, 4  ;;  %v576_v60 = vrot.slane %v574_v29, 5  ;;  %v582_v27 = vrot.slane %v580_v26, 5 }
  0xd9   : > { %v700_v47 = vsel %vm1815_vm12, %v695_v0, %v699_v10  ;;  %v587_v28 = vrot.slane %v585_v17, 4  ;;  %v588_v34 = vshll.u32 %v2111_v55, 16  ;;  %v569_v56 = vsel %vm1815_vm12, %v564_v57, %v568_v39 }
  0xda   : > { %v1523_v16 = vcombine.low %v686_v32, %v700_v47  ;;  %v577_v11 = vor.u32 %v576_v60, %v573_v37  ;;  %v594_v25 = vshll.u32 %v1982_v9, 16  ;;  %v1513_v3 = vcombine.low %v555_v15, %v569_v56 }
  0xdb   : > { %v590_v35 = vrot.slane %v588_v34, 5  ;;  %v708_v14 = vor.u32 %v1910_v62, %v1908_v61  ;;  %v711_v33 = vshll.u32 %v1992_v52, 16  ;;  %v722_v63 = vor.u32 %v1894_v54, %v1886_v45 }
  0xdc   : > { %1126 = vrot.lane.b32.xlu0 %v1523_v16, %s1642_s25  ;;  %v578_v38 = vrot.slane %v577_v11, 4  ;;  %v596_v13 = vrot.slane %v594_v25, 5  ;;  %v725_v39 = vshll.u32 %v2000_v40, 16  ;;  %1062 = vrot.lane.b32.xlu1 %v1513_v3, %s1641_s24  ;;  %v736_v61 = vor.u32 %v1879_v12, %v1860_v8  ;;  %v2337_v11 = vld [vmem:[#allocation5_spill] sm:$0xff]  ;;  %v2338_v25 = vld [vmem:[#allocation6_spill] sm:$0xff]  ;;  %v2340_v3 = vld [vmem:[#allocation8_spill] sm:$0xff] }
  0xdd   : > { %v591_v9 = vor.u32 %v590_v35, %v587_v28  ;;  %v709_v48 = vrot.slane %v708_v14, 4  ;;  %v713_v0 = vrot.slane %v711_v33, 5  ;;  %v723_v52 = vrot.slane %v722_v63, 4  ;;  %v972_v63 = vld [vmem:[#allocation2 + $0x20] sm:$0xe] }
  0xde   : > { %v583_v62 = vsel %vm1815_vm12, %v578_v38, %v582_v27  ;;  %v727_v23 = vrot.slane %v725_v39, 5  ;;  %v739_v24 = vshll.u32 %v2005_v31, 16  ;;  %v737_v54 = vrot.slane %v736_v61, 4  ;;  %v852_v27 = vld [vmem:[#allocation2 + $0x24] sm:$0x1] }
  0xdf   : > { %v592_v22 = vrot.slane %v591_v9, 4  ;;  %v714_v45 = vsel %vm1815_vm12, %v709_v48, %v713_v0  ;;  %v750_v40 = vor.u32 %v1901_v59, %v1899_v58  ;;  %v753_v8 = vshll.u32 %v2011_v20, 16 }
  0xe0   : > { %v728_v49 = vsel %vm1815_vm12, %v723_v52, %v727_v23  ;;  %v741_v29 = vrot.slane %v739_v24, 5  ;;  %v865_v12 = vor.u32 %v1903_v36, %v1896_v30  ;;  %v868_v26 = vshll.u32 %v2020_v5, 16  ;;  %v2342_v52 = vld [vmem:[#allocation10_spill] sm:$0xff]  ;;  %v2343_v24 = vld [vmem:[#allocation16_spill] sm:$0xff] }
  0xe1   : > { %v597_v31 = vsel %vm1815_vm12, %v592_v22, %v596_v13  ;;  %v1524_v15 = vcombine.low %v714_v45, %v728_v49  ;;  %v751_v10 = vrot.slane %v750_v40, 4  ;;  %v755_v59 = vrot.slane %v753_v8, 5  ;;  %v2344_v45 = vld [vmem:[#allocation11_spill] sm:$0xff]  ;;  %v973_v49 = vld [vmem:[#allocation2 + $0x28] sm:$0xe] }
  0xe2   : > { %v1514_v17 = vcombine.low %v583_v62, %v597_v31  ;;  %v742_v58 = vsel %vm1815_vm12, %v737_v54, %v741_v29  ;;  %v866_v57 = vrot.slane %v865_v12, 4  ;;  %v870_v32 = vrot.slane %v868_v26, 5  ;;  %v2341_v62 = vld [vmem:[#allocation9_spill] sm:$0xff]  ;;  %v2345_v54 = vld [vmem:[#allocation12_spill] sm:$0xff] }
  0xe3   : > { %1128 = vrot.lane.b32.xlu0 %v1524_v15, %s1642_s25  ;;  %v879_v20 = vor.u32 %v1920_v6, %v1913_v1  ;;  %v882_v30 = vshll.u32 %v2022_v41, 16  ;;  %v764_v36 = vor.u32 %v1949_v51, %v1947_v2  ;;  %v756_v5 = vsel %vm1815_vm12, %v751_v10, %v755_v59  ;;  %v853_v2 = vld [vmem:[#allocation2 + $0x2c] sm:$0x1]  ;;  %v856_v15 = vld [vmem:[#allocation2 + $0x44] sm:$0x1] }
  0xe4   : > { %1064 = vrot.lane.b32.xlu1 %v1514_v17, %s1641_s24  ;;  %v767_v37 = vshll.u32 %v2033_v21, 16  ;;  %v778_v60 = vor.u32 %v1938_v46, %v1936_v42  ;;  %v781_v47 = vshll.u32 %v2035_v50, 16  ;;  %v1525_v28 = vcombine.low %v742_v58, %v756_v5  ;;  %v2339_v50 = vld [vmem:[#allocation7_spill] sm:$0xff] }
  0xe5   : > { %v871_v1 = vsel %vm1815_vm12, %v866_v57, %v870_v32  ;;  %v880_v6 = vrot.slane %v879_v20, 4  ;;  %v884_v41 = vrot.slane %v882_v30, 5  ;;  %v765_v51 = vrot.slane %v764_v36, 4  ;;  %v2346_v58 = vld [vmem:[#allocation3_spill] sm:$0xff]  ;;  %v977_v32 = vld [vmem:[#allocation2 + $0x48] sm:$0xe] }
  0xe6   : > { %v769_v34 = vrot.slane %v767_v37, 5  ;;  %v779_v56 = vrot.slane %v778_v60, 4  ;;  %v783_v16 = vrot.slane %v781_v47, 5  ;;  %v893_v42 = vor.u32 %v2338_v25, %v2337_v11  ;;  %v2348_v60 = vld [vmem:[#allocation13_spill] sm:$0xff]  ;;  %v2349_v47 = vld [vmem:[#allocation14_spill] sm:$0xff]  ;;  %v2350_v25 = vld [vmem:[#allocation4_spill] sm:$0xff] }
  0xe7   : > { %v885_v21 = vsel %vm1815_vm12, %v880_v6, %v884_v41  ;;  %v896_v46 = vshll.u32 %v852_v27, 16  ;;  %v907_v35 = vor.u32 %v2340_v3, %v2339_v50  ;;  %v910_v13 = vshll.u32 %v853_v2, 16  ;;  %v1622_v3 = vld [vmem:[%s2301_s1 + $0x10] ss:$0 sps:$4 sm:$0x33]  }
  0xe8   : > { %1130 = vrot.lane.b32.xlu1 %v1525_v28, %s1642_s25  ;;  %v1535_v14 = vcombine.low %v871_v1, %v885_v21  ;;  %v770_v33 = vsel %vm1815_vm12, %v765_v51, %v769_v34  ;;  %v784_v38 = vsel %vm1815_vm12, %v779_v56, %v783_v16  ;;  %v894_v9 = vrot.slane %v893_v42, 4  ;;  %v976_v1 = vld [vmem:[#allocation2 + $0x40] sm:$0xe]  ;;  %1590 = vmatprep.subr.msk.bf16.mxu0 %vm1334_vm13, %v1622_v3 }
  0xe9   : > { %v1526_v39 = vcombine.low %v770_v33, %v784_v38  ;;  %v898_v48 = vrot.slane %v896_v46, 5  ;;  %v908_v0 = vrot.slane %v907_v35, 4  ;;  %v912_v61 = vrot.slane %v910_v13, 5  ;;  %v2351_v33 = vld [vmem:[#allocation17_spill] sm:$0xff]  ;;  %1591 = vmatprep.subr.msk.bf16.mxu1 %vm1334_vm13, %v1622_v3 }
  0xea   : > { %1194 = vrot.lane.b32.xlu0 %v1535_v14, %s1643_s26  ;;  %v921_v23 = vor.u32 %v2342_v52, %v2341_v62  ;;  %v924_v22 = vshll.u32 %v2343_v24, 16  ;;  %v935_v40 = vor.u32 %v2345_v54, %v2344_v45  ;;  %v938_v8 = vshll.u32 %v2055_v43, 16 }
  0xeb   : > { %v899_v29 = vsel %vm1815_vm12, %v894_v9, %v898_v48  ;;  %v1501_v12 = vrot.slane %v972_v63, 9  ;;  %v1004_v31 = vrot.slane %v852_v27, 5  ;;  %v913_v10 = vsel %vm1815_vm12, %v908_v0, %v912_v61  ;;  %v1623_v63 = vld [vmem:[%s2301_s1 + $0x8] sm:$0xff]  }
  0xec   : > { %1132 = vrot.lane.b32.xlu1 %v1526_v39, %s1642_s25  ;;  %v922_v26 = vrot.slane %v921_v23, 4  ;;  %v936_v17 = vrot.slane %v935_v40, 4  ;;  %v2347_v59 = vshll.u32 %v2346_v58, 16  ;;  %v1536_v20 = vcombine.low %v899_v29, %v913_v10 }
  0xed   : > { %v926_v30 = vrot.slane %v924_v22, 5  ;;  %v940_v36 = vrot.slane %v938_v8, 5  ;;  %v1502_v5 = vrot.slane %v973_v49, 9  ;;  %v1005_v43 = vsel %vm1808_vm11, %v1501_v12, %v1004_v31 }
  0xee   : > { %v968_v57 = vrot.slane %v2347_v59, 5  ;;  %v1008_v37 = vrot.slane %v853_v2, 5  ;;  %v949_v27 = vor.u32 %v2349_v47, %v2348_v60  ;;  %v952_v28 = vshll.u32 %v856_v15, 16  ;;  %1196 = vrot.lane.b32.xlu0 %v1536_v20, %s1643_s26 }
  0xef   : > { %v927_v6 = vsel %vm1815_vm12, %v922_v26, %v926_v30  ;;  %v941_v41 = vsel %vm1815_vm12, %v936_v17, %v940_v36  ;;  %v1506_v51 = vrot.slane %v977_v32, 9  ;;  %v1024_v34 = vrot.slane %v2346_v58, 5  ;;  %v1625_v17 = vld [vmem:[#allocation2] sm:$0xf]  ;;  %v2352_v58 = vld [vmem:[#allocation15_spill] sm:$0xff] }
  0xf0   : > { %v1537_v56 = vcombine.low %v927_v6, %v941_v41  ;;  %v1009_v2 = vsel %vm1808_vm11, %v1502_v5, %v1008_v37  ;;  %v950_v16 = vrot.slane %v949_v27, 4  ;;  %v954_v21 = vrot.slane %v952_v28, 5 }
  0xf1   : > { %v1540_v11 = vcombine.low %v1005_v43, %v1009_v2  ;;  %v969_v42 = vsel %vm1815_vm12, %v2350_v25, %v968_v57  ;;  %v1505_v46 = vrot.slane %v976_v1, 9  ;;  %v1020_v50 = vrot.slane %v856_v15, 5 }
  0xf2   : > { %1198 = vrot.lane.b32.xlu1 %v1537_v56, %s1643_s26  ;;  %v955_v35 = vsel %vm1815_vm12, %v950_v16, %v954_v21  ;;  %v1509_v14 = vcombine.low %v2080_v4, %v2084_v53  ;;  %v1508_v38 = vcombine.low %v2351_v33, %v2068_v18  ;;  %v1510_v13 = vcombine.low %v2106_v44, %v2111_v55  ;;  %v1624_v18 = vld [vmem:[%s2301_s1] sm:$0xff]  }
  0xf3   : > { %1216 = vrot.lane.b32.xlu0 %v1540_v11, %s1640_s23  ;;  %v1538_v39 = vcombine.low %v955_v35, %v969_v42  ;;  %v1021_v19 = vsel %vm1808_vm11, %v1505_v46, %v1020_v50  ;;  %v1025_v4 = vsel %vm1808_vm11, %v1506_v51, %v1024_v34  ;;  %v1336_v53 = vsel %vm1334_vm13, %v1622_v3, 0 }
  0xf4   : > { %1571 = vmatpush3.bf16.msra.mxu0 %v1336_v53  ;;  %1587 = vmatpush3.bf16.msra.mxu1 %v1336_v53  ;;  %v1542_v9 = vcombine.low %v1021_v19, %v1025_v4  ;;  %v1507_v59 = vcombine.low %v1625_v17, %v2352_v58  ;;  %vm1280_vm4 = vcmask 228352   ;;  %vm1325_vm6 = vcmask 293888  }
  0xf5   : > { %1572 = vmatprep.subr.bf16.mxu0 %v1623_v63  ;;  %1585 = vmatprep.subr.bf16.mxu1 %v1623_v63 }
  0xf6   : > { %1200 = vrot.lane.b32.xlu1 %v1538_v39, %s1643_s26 }
  0xf8   : > { %1573 = vmatpush3.bf16.msra.mxu0 %v1623_v63  ;;  %1588 = vmatpush3.bf16.msra.mxu1 %v1623_v63 }
  0xf9   : > { %1574 = vmatprep.subr.bf16.mxu0 %v1624_v18  ;;  %1586 = vmatprep.subr.bf16.mxu1 %v1624_v18 }
  0xfa   : > { %1220 = vrot.lane.b32.xlu1 %v1542_v9, %s1640_s23 }
  0xfc   : > { %1575 = vmatpush3.bf16.msra.mxu0 %v1624_v18  ;;  %1589 = vmatpush3.bf16.msra.mxu1 %v1624_v18 }
 0x117   : > { %v1107_v7 = vpop.permute.xlu0 %1106 }
 0x11d   : > { %v1111_v48 = vpop.permute.xlu1 %1110 }
 0x11e   : > { %v1109_v0 = vpop.permute.xlu0 %1108 }
 0x122   : > { %v1175_v61 = vpop.permute.xlu0 %1174 }
 0x124   : > { %v1113_v62 = vpop.permute.xlu1 %1112 }
 0x126   : > { %v1177_v52 = vpop.permute.xlu0 %1176 }
 0x128   : > { %v1179_v23 = vpop.permute.xlu1 %1178 }
 0x12c   : > { %v2239_v22 = vpop.permute.xlu1 %1180 }
 0x12d   : > { %v1079_v24 = vpop.permute.xlu0 %1078 }
 0x131   : > { %v1081_v45 = vpop.permute.xlu0 %1080 }
 0x132   : > { %v1083_v54 = vpop.permute.xlu1 %1082 }
 0x135   : > { %v1147_v40 = vpop.permute.xlu0 %1146 }
 0x136   : > { %v1085_v49 = vpop.permute.xlu1 %1084 }
 0x139   : > { %v1149_v29 = vpop.permute.xlu0 %1148 }
 0x13a   : > { %v1151_v8 = vpop.permute.xlu1 %1150 }
 0x13d   : > { %v1215_v12 = vpop.permute.xlu0 %1214 }
 0x13e   : > { %v1153_v31 = vpop.permute.xlu1 %1152 }
 0x142   : > { %v1219_v10 = vpop.permute.xlu1 %1218 }
 0x144   : > { %v1059_v15 = vpop.permute.xlu0 %1058 }
 0x145   : > { %v1225_v57 = vsel %vm1222_vm14, %v1507_v59, %v1059_v15 }
 0x146   : > { %v1237_v30 = vsel %vm1235_vm15, %v1225_v57, %v1079_v24 }
 0x147   : > { %v1246_v36 = vsel %vm1244_vm0, %v1237_v30, %v1107_v7 }
 0x148   : > { %v1061_v26 = vpop.permute.xlu0 %1060 }
 0x149   : > { %v1228_v47 = vsel %vm1222_vm14, %v1508_v38, %v1061_v26 }
 0x14a   : > { %v1239_v1 = vsel %vm1235_vm15, %v1228_v47, %v1081_v45 }
 0x14b   : > { %v1248_v56 = vsel %vm1244_vm0, %v1239_v1, %v1109_v0 }
 0x14e   : > { %v1063_v32 = vpop.permute.xlu1 %1062  ;;  %v1127_v20 = vpop.permute.xlu0 %1126 }
 0x14f   : > { %v1255_v43 = vsel %vm1253_vm1, %v1246_v36, %v1127_v20  ;;  %v1231_v60 = vsel %vm1222_vm14, %v1509_v14, %v1063_v32 }
 0x150   : > { %v1264_v27 = vsel %vm1262_vm2, %v1255_v43, %v1147_v40  ;;  %v1241_v28 = vsel %vm1235_vm15, %v1231_v60, %v1083_v54 }
 0x151   : > { %v1273_v41 = vsel %vm1271_vm3, %v1264_v27, %v1175_v61  ;;  %v1250_v34 = vsel %vm1244_vm0, %v1241_v28, %v1111_v48  ;;  %v1543_v61 = vld [vmem:[%s2302_s2] ss:$0 sm:$0xff] }
 0x155   : > { %v1129_v37 = vpop.permute.xlu0 %1128 }
 0x156   : > { %v1065_v5 = vpop.permute.xlu1 %1064  ;;  %v1257_v11 = vsel %vm1253_vm1, %v1248_v56, %v1129_v37 }
 0x157   : > { %v1234_v16 = vsel %vm1222_vm14, %v1510_v13, %v1065_v5  ;;  %v1266_v3 = vsel %vm1262_vm2, %v1257_v11, %v1149_v29 }
 0x158   : > { %v1243_v46 = vsel %vm1235_vm15, %v1234_v16, %v1085_v49  ;;  %v1275_v33 = vsel %vm1271_vm3, %v1266_v3, %v1177_v52 }
 0x159   : > { %v1252_v44 = vsel %vm1244_vm0, %v1243_v46, %v1113_v62 }
 0x15a   : > { %v1131_v6 = vpop.permute.xlu1 %1130 }
 0x15b   : > { %v1259_v21 = vsel %vm1253_vm1, %v1250_v34, %v1131_v6 }
 0x15c   : > { %v1195_v51 = vpop.permute.xlu0 %1194  ;;  %v1268_v50 = vsel %vm1262_vm2, %v1259_v21, %v1151_v8 }
 0x15d   : > { %v1282_v2 = vsel %vm1280_vm4, %v1273_v41, %v1195_v51  ;;  %v1277_v55 = vsel %vm1271_vm3, %v1268_v50, %v1179_v23 }
 0x15e   : > { %v1133_v25 = vpop.permute.xlu1 %1132  ;;  %v1291_v42 = vsel %vm1289_vm5, %v1282_v2, %v1215_v12 }
 0x15f   : > { %1576 = vmatprep.mubr.msk.bf16.mxu0 %vm1325_vm6, %v1291_v42  ;;  %v1261_v38 = vsel %vm1253_vm1, %v1252_v44, %v1133_v25 }
 0x160   : > { %v1197_v35 = vpop.permute.xlu0 %1196  ;;  %v1270_v53 = vsel %vm1262_vm2, %v1261_v38, %v1153_v31 }
 0x161   : > { %v1284_v63 = vsel %vm1280_vm4, %v1275_v33, %v1197_v35  ;;  %v1279_v9 = vsel %vm1271_vm3, %v1270_v53, %v2239_v22 }
 0x164   : > { %v1199_v14 = vpop.permute.xlu1 %1198 }
 0x165   : > { %v1286_v13 = vsel %vm1280_vm4, %v1277_v55, %v1199_v14  ;;  %v1217_v39 = vpop.permute.xlu0 %1216 }
 0x166   : > { %v1295_v19 = vsel %vm1289_vm5, %v1286_v13, %v1219_v10  ;;  %v1293_v4 = vsel %vm1289_vm5, %v1284_v63, %v1217_v39 }
 0x167   : > { %1580 = vmatprep.mubr.msk.bf16.mxu1 %vm1325_vm6, %v1295_v19  ;;  %1577 = vmatmul.mubr.msk.bf16.vlgmr.msra.gmra.mxu0 %vm1325_vm6, %v1293_v4 }
 0x168   : > { %v1201_v18 = vpop.permute.xlu1 %1200 }
 0x169   : > { %v1288_v7 = vsel %vm1280_vm4, %v1279_v9, %v1201_v18 }
 0x16c   : > { %v1221_v48 = vpop.permute.xlu1 %1220 }
 0x16d   : > { %v1297_v0 = vsel %vm1289_vm5, %v1288_v7, %v1221_v48 }
 0x16e   : > { %1581 = vmatmul.mubr.msk.bf16.vlgmr.msra.gmra.mxu1 %vm1325_vm6, %v1297_v0 }
 0x227   : > { %v1578_v62 = vpop.f32.mrf.mxu0 }
 0x228   : > { %v1381_v52 = vadd.f32 %v1578_v62, %v1543_v61 }
 0x229   : > { %v1372_v23 = vpop.f32.mrf.mxu0 }
 0x22a   : > { %1405 = vst.msk [vmem:[%s170_s11 + $0x10] sm:$0xff] %vm1235_vm15, %v1381_v52  ;;  %v1373_v24 = vadd.f32 %v1543_v61, %v1372_v23 }
 0x22b   : > { %v1579_v22 = vpop.f32.mrf.mxu0 }
 0x22c   : > { %1403 = vst.msk [vmem:[%s170_s11] sm:$0xff] %vm1235_vm15, %v1373_v24  ;;  %v1384_v45 = vadd.f32 %v1579_v22, %v1543_v61 }
 0x22d   : > { %v1375_v54 = vpop.f32.mrf.mxu0 }
 0x22e   : > { %1406 = vst.msk [vmem:[%s170_s11 + $0x18] sm:$0xff] %vm1235_vm15, %v1384_v45  ;;  %v1582_v40 = vpop.f32.mrf.mxu1  ;;  %v1376_v49 = vadd.f32 %v1543_v61, %v1375_v54 }
 0x22f   : > { %v1397_v29 = vadd.f32 %v1582_v40, %v1543_v61 }
 0x230   : > { %1404 = vst.msk [vmem:[%s170_s11 + $0x8] sm:$0xff] %vm1235_vm15, %v1376_v49  ;;  %v1388_v8 = vpop.f32.mrf.mxu1 }
 0x231   : > { %1409 = vst.msk [vmem:[%s170_s11 + $0x30] sm:$0xff] %vm1235_vm15, %v1397_v29  ;;  %v1389_v12 = vadd.f32 %v1543_v61, %v1388_v8 }
 0x232   : > { %v1583_v31 = vpop.f32.mrf.mxu1 }
 0x233   : > { %1407 = vst.msk [vmem:[%s170_s11 + $0x20] sm:$0xff] %vm1235_vm15, %v1389_v12  ;;  %v1400_v15 = vadd.f32 %v1583_v31, %v1543_v61 }
 0x234   : > { %v1391_v10 = vpop.f32.mrf.mxu1 }
 0x235   : > { %1410 = vst.msk [vmem:[%s170_s11 + $0x38] sm:$0xff] %vm1235_vm15, %v1400_v15  ;;  %v1392_v26 = vadd.f32 %v1543_v61, %v1391_v10 }
 0x237   : > { %1408 = vst.msk [vmem:[%s170_s11 + $0x28] sm:$0xff] %vm1235_vm15, %v1392_v26 }
 0x238 PF: > { %s13_s12 = sadd.s32 1, %s1632_s12  }
 0x239   : > { %p10_p4 = scmp.ge.s32.totalorder %s13_s12, 4  }
 0x23b   :  { %12 = sbr.rel (!%p10_p4) target bundleno = 1 (0x1), region = 65 }

</bundles_post_ra>
